<compile_context>
chip_gen: v7x
topology: tpu7x:2x2x1
jax: 0.10.0
libtpu: 0.0.40
codegen_flags: <defaults>
</compile_context>

<pallas_src>
import functools

import jax
import jax.numpy as jnp
from jax.experimental import pallas as pl
from jax.experimental.pallas import tpu as pltpu


def _top1_router_kernel(*refs, expert_capacity: int, use_bias: bool, index_dtype):
    if use_bias:
        h_ref, w_ref, b_ref, idx_ref, probs_ref, logits_ref = refs
    else:
        h_ref, w_ref, idx_ref, probs_ref, logits_ref = refs
        b_ref = None

    Bg, S, H = h_ref.shape          # groups in this block, tokens/group, hidden
    E = w_ref.shape[-1]             # num experts
    N = Bg * S                      # tokens in this block

    # --- router logits: single (N, H) x (H, E) MXU matmul (non-degenerate M).
    #     The hidden tile is upcast in-kernel (exact for bf16), so HBM traffic stays at
    #     the caller's dtype width while the matmul keeps router_dtype=float32 semantics.
    h2 = h_ref[...].astype(jnp.float32).reshape(N, H)
    logits2 = jnp.dot(h2, w_ref[...], preferred_element_type=jnp.float32)   # (N, E)
    if use_bias:
        logits2 = logits2 + b_ref[...]                                      # (1, E) bcast
    logits3 = logits2.reshape(Bg, S, E)
    logits_ref[...] = logits3

    # --- router_probs = max softmax prob, without forming the softmax:
    #     max(softmax(l)) = 1 / sum(exp(l - max(l))).
    m = jnp.max(logits3, axis=-1, keepdims=True)                            # (Bg,S,1)
    denom = jnp.sum(jnp.exp(logits3 - m), axis=-1, keepdims=True)           # (Bg,S,1)
    # EUP reciprocal + one Newton step: keeps the divide off the VPU while staying
    # well inside 1e-5 accuracy.
    r = pl.reciprocal(denom, approx=True)
    r = r * (2.0 - denom * r)
    probs_ref[...] = r

    # --- top-1 expert one-hot (argmax(softmax) == argmax(logits); first-max tie-break,
    #     like torch.argmax).  Expert iota is (1,1,E); broadcast does the rest.
    eidx = jax.lax.broadcasted_iota(jnp.int32, (1, 1, E), 2)
    first = jnp.min(jnp.where(logits3 >= m, eidx, E), axis=-1, keepdims=True)
    one_hot = (eidx == first).astype(jnp.int32)                             # (Bg,S,E)

    # --- token_priority = per-group cumsum of one_hot over tokens.
    #     Segmented Hillis-Steele scan: log2(S) shift-adds (pltpu.roll on the sublane
    #     axis + masked VPU adds).  The (N,1) within-group position iota masks rolled
    #     values that would cross a group boundary (incl. wrap-around).
    oh2 = one_hot.reshape(N, E)
    pos = jax.lax.broadcasted_iota(jnp.int32, (N, 1), 0)
    if S & (S - 1) == 0:
        pos = pos & (S - 1)                       # token position inside its group
    else:
        pos = jax.lax.rem(pos, jnp.int32(S))
    token_priority = oh2
    shift = 1
    while shift < S:
        rolled = pltpu.roll(token_priority, shift, axis=0)
        token_priority = token_priority + jnp.where(pos >= shift, rolled, 0)
        shift *= 2

    # --- capacity mask (reference module: cumsum(one_hot) <= expert_capacity) ---
    keep = token_priority <= expert_capacity
    idx_ref[...] = jnp.where(keep, oh2, 0).astype(index_dtype).reshape(Bg, S, E)


def _vmem_limit_estimate(gpb, S, H, E, h_itemsize, idx_itemsize):
    """Conservative per-grid-step VMEM footprint: double-buffered I/O blocks + temps."""
    in_bytes = gpb * S * H * h_itemsize + H * E * 4 + 512
    out_bytes = gpb * S * E * idx_itemsize + gpb * S * 4 + gpb * S * E * 4
    temps = gpb * S * H * 4 + 8 * gpb * S * E * 4      # f32 upcast + logits/scan temps
    est = 2 * (in_bytes + out_bytes) + temps + (1 << 20)
    # Floor at the v6e scoped default; cap at 128 MiB.  On v7x (64 MiB physical) pick
    # groups_per_block so this estimate stays <= ~48 MiB.
    return int(min(max(int(est * 1.25), 32 << 20), 128 << 20))


def top1_router(hidden_states, weight, bias=None, *, expert_capacity: int,
                groups_per_block=None, index_dtype=jnp.int32,
                single_buffer_inputs: bool = False, vmem_limit_bytes=None):
    """Top-1 Switch router.

    hidden_states: (B, S, H) in its native dtype (f32 or bf16 -- passed to the kernel
                   as-is; the f32 upcast happens in-kernel).
    weight       : (H, E); bias: (E,) or None.  Cast to f32 (router_dtype) here (tiny).

    groups_per_block: groups per grid step.  Default = B (one step; best on the
      single-TC v5e/v6e).  On v7x set B // 2 (any divisor of B works -- no multiple-of-8
      constraint) so the "parallel" grid axis shards across both TensorCores, and size
      it so the VMEM estimate fits 64 MiB.
    index_dtype: dtype of the one-hot expert_index output (int8 quarters its writeback
      if the consumer accepts it).
    single_buffer_inputs: when the grid is a single step, request pl.Buffered(1) on the
      hidden/weight specs to drop the dead second pipeline buffer (halves the largest
      VMEM allocation).  Off by default.
    """
    B, S, H = hidden_states.shape
    E = weight.shape[1]
    use_bias = bias is not None

    if groups_per_block is None:
        groups_per_block = B
    if B % groups_per_block != 0:
        raise ValueError("groups_per_block must divide B")
    gpb = groups_per_block
    num_blocks = B // gpb

    if vmem_limit_bytes is None:
        vmem_limit_bytes = _vmem_limit_estimate(
            gpb, S, H, E, hidden_states.dtype.itemsize, jnp.dtype(index_dtype).itemsize)

    kernel = functools.partial(_top1_router_kernel,
                               expert_capacity=expert_capacity,
                               use_bias=use_bias,
                               index_dtype=index_dtype)

    big_in_kwargs = {}
    if single_buffer_inputs and num_blocks == 1:
        big_in_kwargs = dict(pipeline_mode=pl.Buffered(1))

    in_specs = [
        pl.BlockSpec((gpb, S, H), lambda i: (i, 0, 0), **big_in_kwargs),
        pl.BlockSpec((H, E), lambda i: (0, 0), **big_in_kwargs),
    ]
    args = [hidden_states, weight.astype(jnp.float32)]
    if use_bias:
        in_specs.append(pl.BlockSpec((1, E), lambda i: (0, 0)))
        args.append(bias.astype(jnp.float32).reshape(1, E))

    grid_spec = pltpu.PrefetchScalarGridSpec(
        num_scalar_prefetch=0,
        grid=(num_blocks,),
        in_specs=in_specs,
        out_specs=[
            pl.BlockSpec((gpb, S, E), lambda i: (i, 0, 0)),   # expert_index
            pl.BlockSpec((gpb, S, 1), lambda i: (i, 0, 0)),   # router_probs
            pl.BlockSpec((gpb, S, E), lambda i: (i, 0, 0)),   # router_logits
        ],
    )

    expert_index, router_probs, router_logits = pl.pallas_call(
        kernel,
        grid_spec=grid_spec,
        out_shape=(
            jax.ShapeDtypeStruct((B, S, E), index_dtype),
            jax.ShapeDtypeStruct((B, S, 1), jnp.float32),
            jax.ShapeDtypeStruct((B, S, E), jnp.float32),
        ),
        compiler_params=pltpu.CompilerParams(
            dimension_semantics=("parallel",),
            vmem_limit_bytes=vmem_limit_bytes),
    )(*args)

    # Module semantics: router_probs is returned in the input dtype; logits stay f32.
    return expert_index, router_probs.astype(hidden_states.dtype), router_logits


def _reference(hidden_f32, weight, bias, expert_capacity):
    logits = hidden_f32 @ weight + (bias[None, None, :] if bias is not None else 0.0)
    probs = jax.nn.softmax(logits, axis=-1)
    idx = jnp.argmax(probs, axis=-1)
    one_hot = jax.nn.one_hot(idx, weight.shape[1], dtype=jnp.int32)
    token_priority = jnp.cumsum(one_hot, axis=-2)
    expert_index = one_hot * (token_priority <= expert_capacity).astype(jnp.int32)
    max_probs = jnp.max(probs, axis=-1, keepdims=True)
    return expert_index, max_probs, logits


if __name__ == "__main__":
    # Module config: num_experts=4, expert_capacity=3, hidden_size=32,
    # router_bias=True, router_jitter_noise=0.0, router_dtype="float32".
    B, S, H, E = 2, 8, 32, 4
    expert_capacity = 3

    key = jax.random.PRNGKey(0)
    kx, kw, kb = jax.random.split(key, 3)
    hidden_states = jax.random.normal(kx, (B, S, H), dtype=jnp.float32)
    weight = jax.random.normal(kw, (H, E), dtype=jnp.float32) * 0.05
    bias = jax.random.normal(kb, (E,), dtype=jnp.float32) * 0.01

    # --- f32 input, with bias ---
    expert_index, router_probs, router_logits = jax.block_until_ready(
        top1_router(hidden_states, weight, bias, expert_capacity=expert_capacity))
    ref_idx, ref_probs, ref_logits = _reference(hidden_states, weight, bias, expert_capacity)
    assert expert_index.shape == (B, S, E) and expert_index.dtype == jnp.int32
    assert router_probs.shape == (B, S, 1)
    assert router_logits.shape == (B, S, E)
    assert jnp.array_equal(expert_index, ref_idx)
    assert jnp.allclose(router_probs, ref_probs, atol=1e-5)
    assert jnp.allclose(router_logits, ref_logits, atol=1e-5)

    # --- f32 input, no bias (bias input / DMA dropped entirely) ---
    idx_nb, probs_nb, logits_nb = jax.block_until_ready(
        top1_router(hidden_states, weight, None, expert_capacity=expert_capacity))
    ref_idx_nb, ref_probs_nb, ref_logits_nb = _reference(
        hidden_states, weight, None, expert_capacity)
    assert jnp.array_equal(idx_nb, ref_idx_nb)
    assert jnp.allclose(probs_nb, ref_probs_nb, atol=1e-5)
    assert jnp.allclose(logits_nb, ref_logits_nb, atol=1e-5)

    # --- bf16 input (native-dtype streaming; exact in-kernel upcast to router_dtype) ---
    hidden_bf16 = hidden_states.astype(jnp.bfloat16)
    idx_bf, probs_bf, logits_bf = jax.block_until_ready(
        top1_router(hidden_bf16, weight, bias, expert_capacity=expert_capacity))
    ref_idx_bf, ref_probs_bf, ref_logits_bf = _reference(
        hidden_bf16.astype(jnp.float32), weight, bias, expert_capacity)
    assert probs_bf.dtype == jnp.bfloat16 and logits_bf.dtype == jnp.float32
    assert jnp.array_equal(idx_bf, ref_idx_bf)
    assert jnp.allclose(probs_bf.astype(jnp.float32), ref_probs_bf, atol=1e-2)
    assert jnp.allclose(logits_bf, ref_logits_bf, atol=1e-4)

    print("KERNEL_OK")
</pallas_src>

<mosaic_0001>
module attributes {stable_mosaic.version = 11 : i64} {
  func.func @_top1_router_kernel(%arg0: i32, %arg1: memref<2x8x32xf32, #tpu.memory_space<vmem>>, %arg2: memref<32x4xf32, #tpu.memory_space<vmem>>, %arg3: memref<1x4xf32, #tpu.memory_space<vmem>>, %arg4: memref<2x8x4xi32, #tpu.memory_space<vmem>>, %arg5: memref<2x8x1xf32, #tpu.memory_space<vmem>>, %arg6: memref<2x8x4xf32, #tpu.memory_space<vmem>>) attributes {dimension_semantics = [#tpu.dimension_semantics<parallel>], iteration_bounds = array<i64: 1>, scalar_prefetch = 0 : i64, scratch_operands = 0 : i64, tpu.core_type = #tpu.core_type<tc>, window_params = [{transform_indices = @transform_0, window_bounds = array<i64: 2, 8, 32>}, {pipeline_mode = #tpu.pipeline_mode<synchronous>, transform_indices = @transform_1, window_bounds = array<i64: 32, 4>}, {pipeline_mode = #tpu.pipeline_mode<synchronous>, transform_indices = @transform_2, window_bounds = array<i64: 1, 4>}, {transform_indices = @transform_3, window_bounds = array<i64: 2, 8, 4>}, {transform_indices = @transform_4, window_bounds = array<i64: 2, 8, 1>}, {transform_indices = @transform_5, window_bounds = array<i64: 2, 8, 4>}]} {
    %c0 = arith.constant 0 : index
    %c0_0 = arith.constant 0 : index
    %c0_1 = arith.constant 0 : index
    %0 = vector.load %arg1[%c0, %c0_0, %c0_1] : memref<2x8x32xf32, #tpu.memory_space<vmem>>, vector<2x8x32xf32>
    %1 = vector.shape_cast %0 : vector<2x8x32xf32> to vector<16x32xf32>
    %c0_2 = arith.constant 0 : index
    %c0_3 = arith.constant 0 : index
    %2 = vector.load %arg2[%c0_2, %c0_3] : memref<32x4xf32, #tpu.memory_space<vmem>>, vector<32x4xf32>
    %cst = arith.constant dense<0.000000e+00> : vector<16x4xf32>
    %3 = tpu.matmul %1, %2, %cst {dimension_numbers = #tpu.dot_dimension_numbers<[1], [0], [0], [1], [0, 0, 1, 1], [], []>} : vector<16x32xf32>, vector<32x4xf32>, vector<16x4xf32> -> vector<16x4xf32>
    %c0_4 = arith.constant 0 : index
    %c0_5 = arith.constant 0 : index
    %4 = vector.load %arg3[%c0_4, %c0_5] : memref<1x4xf32, #tpu.memory_space<vmem>>, vector<1x4xf32>
    %5 = vector.broadcast %4 : vector<1x4xf32> to vector<16x4xf32>
    %6 = arith.addf %3, %5 : vector<16x4xf32>
    %7 = vector.shape_cast %6 : vector<16x4xf32> to vector<2x8x4xf32>
    %c0_6 = arith.constant 0 : index
    %c0_7 = arith.constant 0 : index
    %c0_8 = arith.constant 0 : index
    %8 = vector.load %arg6[%c0_6, %c0_7, %c0_8] : memref<2x8x4xf32, #tpu.memory_space<vmem>>, vector<2x8x4xf32>
    tpu.vector_store %arg6[%c0_6, %c0_7, %c0_8], %7 {strides = array<i32>} : memref<2x8x4xf32, #tpu.memory_space<vmem>>, vector<2x8x4xf32>,
    %cst_9 = arith.constant dense<0xFF800000> : vector<2x8xf32>
    %9 = vector.multi_reduction <maximumf>, %7, %cst_9 [2] : vector<2x8x4xf32> to vector<2x8xf32>
    %10 = vector.shape_cast %9 : vector<2x8xf32> to vector<2x8x1xf32>
    %11 = vector.broadcast %10 : vector<2x8x1xf32> to vector<2x8x4xf32>
    %12 = arith.subf %7, %11 : vector<2x8x4xf32>
    %13 = math.exp %12 : vector<2x8x4xf32>
    %cst_10 = arith.constant dense<0.000000e+00> : vector<2x8xf32>
    %14 = vector.multi_reduction <add>, %13, %cst_10 [2] : vector<2x8x4xf32> to vector<2x8xf32>
    %15 = vector.shape_cast %14 : vector<2x8xf32> to vector<2x8x1xf32>
    %16 = tpu.reciprocal %15 {approx = true} : vector<2x8x1xf32> -> vector<2x8x1xf32>
    %17 = arith.mulf %15, %16 : vector<2x8x1xf32>
    %cst_11 = arith.constant 2.000000e+00 : f32
    %18 = vector.broadcast %cst_11 : f32 to vector<2x8x1xf32>
    %19 = arith.subf %18, %17 : vector<2x8x1xf32>
    %20 = arith.mulf %16, %19 : vector<2x8x1xf32>
    %c0_12 = arith.constant 0 : index
    %c0_13 = arith.constant 0 : index
    %c0_14 = arith.constant 0 : index
    %21 = vector.load %arg5[%c0_12, %c0_13, %c0_14] : memref<2x8x1xf32, #tpu.memory_space<vmem>>, vector<2x8x1xf32>
    tpu.vector_store %arg5[%c0_12, %c0_13, %c0_14], %20 {strides = array<i32>} : memref<2x8x1xf32, #tpu.memory_space<vmem>>, vector<2x8x1xf32>,
    %22 = tpu.iota {dimensions = array<i32: 2>} : vector<1x1x4xi32>
    %23 = vector.broadcast %10 : vector<2x8x1xf32> to vector<2x8x4xf32>
    %24 = arith.cmpf oge, %7, %23 : vector<2x8x4xf32>
    %c4_i32 = arith.constant 4 : i32
    %25 = vector.shape_cast %22 : vector<1x1x4xi32> to vector<1x1x4xi32>
    %26 = vector.broadcast %25 : vector<1x1x4xi32> to vector<2x8x4xi32>
    %27 = vector.broadcast %c4_i32 : i32 to vector<2x8x4xi32>
    %28 = arith.select %24, %26, %27 : vector<2x8x4xi1>, vector<2x8x4xi32>
    %cst_15 = arith.constant dense<2147483647> : vector<2x8xi32>
    %29 = vector.multi_reduction <minsi>, %28, %cst_15 [2] : vector<2x8x4xi32> to vector<2x8xi32>
    %30 = vector.shape_cast %29 : vector<2x8xi32> to vector<2x8x1xi32>
    %31 = vector.broadcast %22 : vector<1x1x4xi32> to vector<2x8x4xi32>
    %32 = vector.broadcast %30 : vector<2x8x1xi32> to vector<2x8x4xi32>
    %33 = arith.cmpi eq, %31, %32 : vector<2x8x4xi32>
    %34 = arith.extui %33 : vector<2x8x4xi1> to vector<2x8x4xi32>
    %35 = vector.shape_cast %34 : vector<2x8x4xi32> to vector<16x4xi32>
    %36 = tpu.iota {dimensions = array<i32: 0>} : vector<16x1xi32>
    %c7_i32 = arith.constant 7 : i32
    %37 = vector.broadcast %c7_i32 : i32 to vector<16x1xi32>
    %38 = arith.andi %36, %37 : vector<16x1xi32>
    %c1_i32 = arith.constant 1 : i32
    %39 = tpu.dynamic_rotate %35 by %c1_i32 dim 0 : vector<16x4xi32>, i32 -> vector<16x4xi32>
    %c1_i32_16 = arith.constant 1 : i32
    %40 = vector.broadcast %c1_i32_16 : i32 to vector<16x1xi32>
    %41 = arith.cmpi sge, %38, %40 : vector<16x1xi32>
    %c0_i32 = arith.constant 0 : i32
    %42 = vector.shape_cast %41 : vector<16x1xi1> to vector<16x1xi1>
    %43 = vector.broadcast %42 : vector<16x1xi1> to vector<16x4xi1>
    %44 = vector.broadcast %c0_i32 : i32 to vector<16x4xi32>
    %45 = arith.select %43, %39, %44 : vector<16x4xi1>, vector<16x4xi32>
    %46 = arith.addi %35, %45 : vector<16x4xi32>
    %c2_i32 = arith.constant 2 : i32
    %47 = tpu.dynamic_rotate %46 by %c2_i32 dim 0 : vector<16x4xi32>, i32 -> vector<16x4xi32>
    %c2_i32_17 = arith.constant 2 : i32
    %48 = vector.broadcast %c2_i32_17 : i32 to vector<16x1xi32>
    %49 = arith.cmpi sge, %38, %48 : vector<16x1xi32>
    %c0_i32_18 = arith.constant 0 : i32
    %50 = vector.shape_cast %49 : vector<16x1xi1> to vector<16x1xi1>
    %51 = vector.broadcast %50 : vector<16x1xi1> to vector<16x4xi1>
    %52 = vector.broadcast %c0_i32_18 : i32 to vector<16x4xi32>
    %53 = arith.select %51, %47, %52 : vector<16x4xi1>, vector<16x4xi32>
    %54 = arith.addi %46, %53 : vector<16x4xi32>
    %c4_i32_19 = arith.constant 4 : i32
    %55 = tpu.dynamic_rotate %54 by %c4_i32_19 dim 0 : vector<16x4xi32>, i32 -> vector<16x4xi32>
    %c4_i32_20 = arith.constant 4 : i32
    %56 = vector.broadcast %c4_i32_20 : i32 to vector<16x1xi32>
    %57 = arith.cmpi sge, %38, %56 : vector<16x1xi32>
    %c0_i32_21 = arith.constant 0 : i32
    %58 = vector.shape_cast %57 : vector<16x1xi1> to vector<16x1xi1>
    %59 = vector.broadcast %58 : vector<16x1xi1> to vector<16x4xi1>
    %60 = vector.broadcast %c0_i32_21 : i32 to vector<16x4xi32>
    %61 = arith.select %59, %55, %60 : vector<16x4xi1>, vector<16x4xi32>
    %62 = arith.addi %54, %61 : vector<16x4xi32>
    %c3_i32 = arith.constant 3 : i32
    %63 = vector.broadcast %c3_i32 : i32 to vector<16x4xi32>
    %64 = arith.cmpi sle, %62, %63 : vector<16x4xi32>
    %c0_i32_22 = arith.constant 0 : i32
    %65 = vector.broadcast %c0_i32_22 : i32 to vector<16x4xi32>
    %66 = arith.select %64, %35, %65 : vector<16x4xi1>, vector<16x4xi32>
    %67 = vector.shape_cast %66 : vector<16x4xi32> to vector<2x8x4xi32>
    %c0_23 = arith.constant 0 : index
    %c0_24 = arith.constant 0 : index
    %c0_25 = arith.constant 0 : index
    %68 = vector.load %arg4[%c0_23, %c0_24, %c0_25] : memref<2x8x4xi32, #tpu.memory_space<vmem>>, vector<2x8x4xi32>
    tpu.vector_store %arg4[%c0_23, %c0_24, %c0_25], %67 {strides = array<i32>} : memref<2x8x4xi32, #tpu.memory_space<vmem>>, vector<2x8x4xi32>,
    return
  }
  func.func @transform_0(%arg0: i32) -> (i32, i32, i32) {
    %c0_i32 = arith.constant 0 : i32
    %c0_i32_0 = arith.constant 0 : i32
    %c0_i32_1 = arith.constant 0 : i32
    return %arg0, %c0_i32, %c0_i32_0 : i32, i32, i32
  }
  func.func @transform_1(%arg0: i32) -> (i32, i32) {
    %c0_i32 = arith.constant 0 : i32
    %c0_i32_0 = arith.constant 0 : i32
    %c0_i32_1 = arith.constant 0 : i32
    return %c0_i32, %c0_i32_0 : i32, i32
  }
  func.func @transform_2(%arg0: i32) -> (i32, i32) {
    %c0_i32 = arith.constant 0 : i32
    %c0_i32_0 = arith.constant 0 : i32
    %c0_i32_1 = arith.constant 0 : i32
    return %c0_i32, %c0_i32_0 : i32, i32
  }
  func.func @transform_3(%arg0: i32) -> (i32, i32, i32) {
    %c0_i32 = arith.constant 0 : i32
    %c0_i32_0 = arith.constant 0 : i32
    %c0_i32_1 = arith.constant 0 : i32
    return %arg0, %c0_i32, %c0_i32_0 : i32, i32, i32
  }
  func.func @transform_4(%arg0: i32) -> (i32, i32, i32) {
    %c0_i32 = arith.constant 0 : i32
    %c0_i32_0 = arith.constant 0 : i32
    %c0_i32_1 = arith.constant 0 : i32
    return %arg0, %c0_i32, %c0_i32_0 : i32, i32, i32
  }
  func.func @transform_5(%arg0: i32) -> (i32, i32, i32) {
    %c0_i32 = arith.constant 0 : i32
    %c0_i32_0 = arith.constant 0 : i32
    %c0_i32_1 = arith.constant 0 : i32
    return %arg0, %c0_i32, %c0_i32_0 : i32, i32, i32
  }
}

</mosaic_0001>

<bundles_post_ra>
// kernel: tpu_custom_call.1
= control target key start
LH: loop header
LB: loop body
LE: loop exit
PB: predicated region body
PF: predicated region fallthrough
CT: control target
= control target key end

     0   :  { %vm30_vm0 = vcmask 261120   ;;  %vm112_vm1 = vcmask 31744   ;;  %v144_v15 = vlaneseq  ;;  %v289_v58 = vmov 0   ;;  %s384_s1 = inlined_call_operand.vmem [shape: f32[32,4], index: 1, kind: input, shape index: {}]   ;;  %s385_s0 = inlined_call_operand.vmem [shape: f32[2,8,32], index: 0, kind: input, shape index: {}]   ;;  %s386_s2 = inlined_call_operand.vmem [shape: f32[1,4], index: 2, kind: input, shape index: {}]   ;;  %s387_s5 = inlined_call_operand.vmem [shape: f32[2,8,4], index: 5, kind: output, shape index: {2}]   ;;  %s388_s4 = inlined_call_operand.vmem [shape: f32[2,8,1], index: 4, kind: output, shape index: {1}]   ;;  %s389_s3 = inlined_call_operand.vmem [shape: s32[2,8,4], index: 3, kind: output, shape index: {0}]  }
   0x1   :  { %v19_v0 = vld [vmem:[%s384_s1] sm:$0xff]  ;;  %v20_v1 = vld [vmem:[%s384_s1 + $0x8] sm:$0xff]  ;;  %v21_v2 = vld [vmem:[%s384_s1 + $0x10] sm:$0xff]  ;;  %vm141_vm14 = vcmask 7168  }
   0x2   :  { %v272_v3 = vpack.c.bf16 %v20_v1, %v19_v0  ;;  %v22_v4 = vld [vmem:[%s384_s1 + $0x18] sm:$0xff]  ;;  %v17_v5 = vld [vmem:[%s385_s0] sm:$0xff]  ;;  %v18_v7 = vld [vmem:[%s385_s0 + $0x8] sm:$0xff]  ;;  %v351_v16 = vand.u32 127, %v144_v15  ;;  %v359_v44 = vshrl.u32 %v144_v15, 7 }
   0x3   :  { %v276_v6 = vpack.c.bf16 %v22_v4, %v21_v2  ;;  %269 = vmatprep.mubr.msk.f32.mxu0 %vm30_vm0, %v17_v5  ;;  %v252_v8 = vld [vmem:[%s386_s2] ss:$0 sm:$0xff] }
   0x4   :  { %273 = vmatprep.subr.bf16.mxu0 %v272_v3  ;;  %v186_v50 = vadd.s32 8, %v359_v44  ;;  %v187_v55 = vand.u32 7, %v359_v44  ;;  %vm191_vm8 = vcmp.lt.s32.totalorder %v359_v44, 1  ;;  %vm206_vm11 = vcmp.lt.s32.totalorder %v359_v44, 2 }
   0x5   :  { %275 = vmatpush3.bf16.msra.mxu0 %v272_v3  ;;  %vm221_vm15 = vcmp.lt.s32.totalorder %v359_v44, 4 }
   0x6   :  { %277 = vmatprep.subr.bf16.mxu0 %v276_v6  ;;  %v188_v56 = vand.u32 7, %v186_v50  ;;  %vm194_vm9 = vcmp.ge.s32.totalorder %v187_v55, 1  ;;  %vm209_vm12 = vcmp.ge.s32.totalorder %v187_v55, 2 }
   0x8   :  { %vm195_vm10 = vcmp.ge.s32.totalorder %v188_v56, 1  ;;  %vm210_vm13 = vcmp.ge.s32.totalorder %v188_v56, 2 }
   0x9   :  { %279 = vmatpush3.bf16.msra.mxu0 %v276_v6 }
   0xc   :  { %270 = vmatmul.mubr.msk.f32.vlgmr.msra.gmra.mrb[0].mxu0 %vm30_vm0, %v18_v7  ;;  %vm224_vm0 = vcmp.ge.s32.totalorder %v187_v55, 4 }
  0xdf   :  { %v271_v9 = vpop.f32.mrb[0].mxu0 }
  0xe0   :  { %v109_v10 = vadd.f32 %v271_v9, %v252_v8  ;;  %v103_v11 = vpop.f32.mrb[1].mxu0 }
  0xe1   :  { %v104_v12 = vadd.f32 %v252_v8, %v103_v11 }
  0xe2   :  { %114 = vst.msk [vmem:[%s387_s5 + $0x8] sm:$0xff] %vm112_vm1, %v109_v10  ;;  %v118_v14 = vsel %vm112_vm1, %v109_v10, -inf }
  0xe3   :  { %113 = vst.msk [vmem:[%s387_s5] sm:$0xff] %vm112_vm1, %v104_v12  ;;  %v115_v13 = vsel %vm112_vm1, %v104_v12, -inf }
  0xe4   :  { %116 = vmax.xlane.f32.xlu0 %v115_v13 }
  0xe8   :  { %119 = vmax.xlane.f32.xlu0 %v118_v14 }
 0x171   :  { %v117_v17 = vpop.xlane.xlu0 %116 }
 0x172   :  { %vm146_vm2 = vcmp.ge.f32.partialorder %v104_v12, %v117_v17  ;;  %v121_v27 = vsub.f32 %v104_v12, %v117_v17 }
 0x173   :  { %v148_v18 = vsel %vm146_vm2, %v351_v16, 4  ;;  %vm225_vm2 = vcmp.ge.s32.totalorder %v188_v56, 4 }
 0x174   :  { %v150_v19 = vsel %vm112_vm1, %v148_v18, 2147483647  ;;  %v123_v28 = vmul.f32 1.442695, %v121_v27 }
 0x175   :  { %v120_v20 = vpop.xlane.xlu0 %119  ;;  %v152_v21 = vshra.s32 %v150_v19, 16  ;;  %v151_v31 = vand.u32 65535, %v150_v19 }
 0x176   :  { %vm147_vm3 = vcmp.ge.f32.partialorder %v109_v10, %v120_v20  ;;  %v122_v29 = vsub.f32 %v109_v10, %v120_v20  ;;  %281 = vpow2.f32 %v123_v28 }
 0x177   :  { %v149_v22 = vsel %vm147_vm3, %v351_v16, 4  ;;  %v154_v23 = vcvt.s32.f32 %v152_v21  ;;  %v153_v33 = vcvt.s32.f32 %v151_v31 }
 0x178   :  { %v165_v24 = vsel %vm112_vm1, %v149_v22, 2147483647  ;;  %v125_v30 = vmul.f32 1.442695, %v122_v29 }
 0x179   :  { %155 = vmin.xlane.f32.xlu1 %v154_v23  ;;  %v167_v25 = vshra.s32 %v165_v24, 16  ;;  %v166_v34 = vand.u32 65535, %v165_v24 }
 0x17a   :  { %283 = vpow2.f32 %v125_v30 }
 0x17b   :  { %v169_v26 = vcvt.s32.f32 %v167_v25  ;;  %v168_v38 = vcvt.s32.f32 %v166_v34 }
 0x17d   :  { %170 = vmin.xlane.f32.xlu1 %v169_v26 }
 0x180   :  { %v282_v36 = vpop.eup %281 }
 0x181   :  { %v127_v39 = vsel %vm112_vm1, %v282_v36, 0.0 }
 0x184   :  { %v284_v41 = vpop.eup %283 }
 0x185   :  { %v130_v42 = vsel %vm112_vm1, %v284_v41, 0.0 }
 0x206   :  { %v156_v32 = vpop.xlane.xlu1 %155 }
 0x207   :  { %vm157_vm4 = vcmp.eq.f32.partialorder %v154_v23, %v156_v32  ;;  %v162_v43 = vcvt.f32.s32 %v156_v32 }
 0x208   :  { %v158_v35 = vsel %vm157_vm4, %v153_v33, inf }
 0x209   :  { %159 = vmin.xlane.f32.xlu0 %v158_v35  ;;  %v163_v46 = vshll.u32 %v162_v43, 16 }
 0x20a   :  { %v171_v37 = vpop.xlane.xlu1 %170 }
 0x20b   :  { %vm172_vm5 = vcmp.eq.f32.partialorder %v169_v26, %v171_v37  ;;  %v177_v47 = vcvt.f32.s32 %v171_v37 }
 0x20c   :  { %v173_v40 = vsel %vm172_vm5, %v168_v38, inf }
 0x20d   :  { %128 = vadd.xlane.f32.xlu0 %v127_v39  ;;  %174 = vmin.xlane.f32.xlu1 %v173_v40  ;;  %v178_v53 = vshll.u32 %v177_v47, 16 }
 0x211   :  { %131 = vadd.xlane.f32.xlu1 %v130_v42 }
 0x296   :  { %v160_v45 = vpop.xlane.xlu0 %159 }
 0x297   :  { %v161_v48 = vcvt.f32.s32 %v160_v45 }
 0x299   :  { %v164_v49 = vadd.s32 %v163_v46, %v161_v48 }
 0x29a   :  { %v175_v51 = vpop.xlane.xlu1 %174  ;;  %v129_v52 = vpop.xlane.xlu0 %128 }
 0x29b   :  { %vm180_vm6 = vcmp.eq.s32.totalorder %v351_v16, %v164_v49  ;;  %v176_v54 = vcvt.f32.s32 %v175_v51  ;;  %285 = vrcp.f32 %v129_v52 }
 0x29c   :  { %v182_v59 = vsel %vm180_vm6, 1, %v289_v58 }
 0x29d   :  { %v179_v57 = vadd.s32 %v178_v53, %v176_v54  ;;  %v189_v62 = vrot.slane %v182_v59, 7 }
 0x29e   :  { %v132_v60 = vpop.xlane.xlu1 %131 }
 0x29f   :  { %vm181_vm7 = vcmp.eq.s32.totalorder %v351_v16, %v179_v57  ;;  %287 = vrcp.f32 %v132_v60 }
 0x2a0   :  { %v183_v61 = vsel %vm181_vm7, 1, %v289_v58 }
 0x2a1   :  { %v190_v63 = vrot.slane %v183_v61, 7 }
 0x2a3   :  { %v192_v0 = vsel %vm191_vm8, %v189_v62, %v190_v63  ;;  %v193_v1 = vsel %vm191_vm8, %v190_v63, %v189_v62 }
 0x2a4   :  { %v200_v2 = vsel %vm194_vm9, %v193_v1, 0  ;;  %v201_v3 = vsel %vm195_vm10, %v192_v0, 0 }
 0x2a5   :  { %v286_v4 = vpop.eup %285  ;;  %v202_v5 = vadd.s32 %v200_v2, %v182_v59  ;;  %v203_v6 = vadd.s32 %v201_v3, %v183_v61 }
 0x2a6   :  { %v135_v7 = vmul.f32 %v286_v4, %v129_v52 }
 0x2a7   :  { %v204_v8 = vrot.slane %v202_v5, 6  ;;  %v205_v9 = vrot.slane %v203_v6, 6 }
 0x2a8   :  { %v137_v10 = vsub.f32 2.0, %v135_v7 }
 0x2a9   :  { %v288_v11 = vpop.eup %287  ;;  %v207_v12 = vsel %vm206_vm11, %v204_v8, %v205_v9  ;;  %v208_v13 = vsel %vm206_vm11, %v205_v9, %v204_v8 }
 0x2aa   :  { %v215_v14 = vsel %vm209_vm12, %v208_v13, 0  ;;  %v216_v15 = vsel %vm210_vm13, %v207_v12, 0  ;;  %v139_v16 = vmul.f32 %v286_v4, %v137_v10  ;;  %v136_v17 = vmul.f32 %v288_v11, %v132_v60 }
 0x2ab   :  { %v217_v18 = vadd.s32 %v215_v14, %v202_v5  ;;  %v218_v19 = vadd.s32 %v216_v15, %v203_v6 }
 0x2ac   :  { %142 = vst.msk [vmem:[%s388_s4] sm:$0xff] %vm141_vm14, %v139_v16  ;;  %v138_v20 = vsub.f32 2.0, %v136_v17 }
 0x2ad   :  { %v219_v21 = vrot.slane %v217_v18, 4  ;;  %v220_v22 = vrot.slane %v218_v19, 4 }
 0x2ae   :  { %v140_v23 = vmul.f32 %v288_v11, %v138_v20 }
 0x2af   :  { %v222_v24 = vsel %vm221_vm15, %v219_v21, %v220_v22  ;;  %v223_v25 = vsel %vm221_vm15, %v220_v22, %v219_v21 }
 0x2b0   :  { %v230_v26 = vsel %vm224_vm0, %v223_v25, 0  ;;  %v231_v27 = vsel %vm225_vm2, %v222_v24, 0  ;;  %143 = vst.msk [vmem:[%s388_s4 + $0x8] sm:$0xff] %vm141_vm14, %v140_v23 }
 0x2b1   :  { %v232_v28 = vadd.s32 %v230_v26, %v217_v18  ;;  %v233_v29 = vadd.s32 %v231_v27, %v218_v19 }
 0x2b3   :  { %vm234_vm3 = vcmp.le.s32.totalorder %v232_v28, 3  ;;  %vm235_vm4 = vcmp.le.s32.totalorder %v233_v29, 3 }
 0x2b4   :  { %v236_v30 = vsel %vm234_vm3, %v182_v59, 0  ;;  %v237_v31 = vsel %vm235_vm4, %v183_v61, 0 }
 0x2b5   :  { %238 = vst.msk [vmem:[%s389_s3] sm:$0xff] %vm112_vm1, %v236_v30  ;;  %239 = vst.msk [vmem:[%s389_s3 + $0x8] sm:$0xff] %vm112_vm1, %v237_v31 }

</bundles_post_ra>
